<compile_context>
chip_gen: v7x
topology: tpu7x:2x2x1
jax: 0.10.0
libtpu: 0.0.40
codegen_flags: <defaults>
</compile_context>

<pallas_src>
import jax
import jax.numpy as jnp
import numpy as np
from jax.experimental import pallas as pl
from jax.experimental.pallas import tpu as pltpu

# ---- static module configuration (ObsEncoder.__init__ cfg) ----
INPUT_DIMS = (16, 32)     # cfg.input_dim
OUTPUT_DIMS = (64, 64)    # cfg.output_dim (hidden_size == output_size inside MLP_Proj)
NUM_LAYERS = (2, 1)       # cfg.num_layers
PROJ_DIM = 128            # cfg.proj_dim   (multiple of 128 -> lane-dense output)


# ---------------------------------------------------------------------------
# ONE-TIME parameter prep (out of the per-forward hot path):
# pack every Linear into a single block-diagonal (rows, lanes) f32 slab.
# ---------------------------------------------------------------------------
def pack_obs_encoder_params(enc_params, final_w, final_b):
    """enc_params: list over encoders; each a list of (W, b) in torch Linear
    layout (W: (d_out, d_in), b: (d_out,)).  final_w: (proj_dim, sum(out_dims)),
    final_b: (proj_dim,).  Returns (slab, meta) where meta holds the static
    slice offsets / ReLU lane-intervals the kernel needs."""
    enc_params = [[(np.asarray(w, np.float32), np.asarray(b, np.float32))
                   for (w, b) in layers] for layers in enc_params]
    final_w = np.asarray(final_w, np.float32)
    final_b = np.asarray(final_b, np.float32)

    L = max(len(p) for p in enc_params)
    proj_dim = final_w.shape[0]
    cat_dim = sum(layers[-1][0].shape[0] for layers in enc_params)
    in_width = sum(layers[0][0].shape[1] for layers in enc_params)

    # per-stage, per-encoder (W(in,out), b(out,), relu?); identity passthrough
    # for encoders that have already produced their output.
    stage_blocks = []
    for l in range(L):
        blocks = []
        for layers in enc_params:
            Li = len(layers)
            if l < Li:
                w, b = layers[l]
                blocks.append((w.T, b, l < Li - 1))       # ReLU after all but last layer
            else:
                d = layers[-1][0].shape[0]
                blocks.append((np.eye(d, dtype=np.float32),
                               np.zeros((d,), np.float32), False))
        stage_blocks.append(blocks)

    lanes = max(proj_dim, cat_dim,
                max(sum(blk[0].shape[1] for blk in blocks) for blocks in stage_blocks))
    assert lanes % 128 == 0, "proj_dim / sum(output_dim) should be a multiple of 128"

    ws, bs, relu_ivs = [], [], []
    for si, blocks in enumerate(stage_blocks):
        din = in_width if si == 0 else lanes
        W = np.zeros((din, lanes), np.float32)
        bvec = np.zeros((lanes,), np.float32)
        ivs = []
        r = c = 0
        for (w, b, relu) in blocks:
            W[r:r + w.shape[0], c:c + w.shape[1]] = w
            bvec[c:c + w.shape[1]] = b
            if relu:
                ivs.append((int(c), int(c + w.shape[1])))
            r += w.shape[0]
            c += w.shape[1]
        ws.append(W); bs.append(bvec); relu_ivs.append(tuple(ivs))

    # final Linear over the (block-layout) concatenation
    Wf = np.zeros((lanes, lanes), np.float32)
    Wf[:cat_dim, :proj_dim] = final_w.T
    bf = np.zeros((lanes,), np.float32)
    bf[:proj_dim] = final_b
    ws.append(Wf); bs.append(bf); relu_ivs.append(())

    # pack into one slab with 8-aligned (sublane-aligned) row offsets
    rup8 = lambda n: -(-n // 8) * 8
    w_slices, b_rows, row = [], [], 0
    for W in ws:
        w_slices.append((row, W.shape[0])); row += rup8(W.shape[0])
        b_rows.append(row);                 row += 8
    slab = np.zeros((row, lanes), np.float32)
    for (r0, nr), W in zip(w_slices, ws):
        slab[r0:r0 + nr] = W
    for r0, bvec in zip(b_rows, bs):
        slab[r0] = bvec

    meta = dict(w_slices=tuple(w_slices), b_rows=tuple(b_rows),
                relu_intervals=tuple(relu_ivs),
                in_width=int(in_width), proj_dim=int(proj_dim), lanes=int(lanes))
    return jnp.asarray(slab), meta


# ---------------------------------------------------------------------------
# fused kernel: 3 chained block-diagonal matmuls on one (bt, lanes) tile
# ---------------------------------------------------------------------------
def _make_kernel(w_slices, b_rows, relu_intervals, lanes):
    n_stages = len(w_slices)

    def kernel(x_ref, slab_ref, o_ref):
        h = x_ref[...].astype(jnp.float32)                        # (bt, in_width)
        for s in range(n_stages):
            r0, nr = w_slices[s]
            w = slab_ref[r0:r0 + nr, :]                           # (d_in, lanes), 8-aligned static slice
            b = slab_ref[b_rows[s]:b_rows[s] + 1, :]              # (1, lanes)
            h = jnp.dot(h, w, preferred_element_type=jnp.float32) + b
            ivs = relu_intervals[s]
            if ivs:                                               # ReLU only on the lanes that need it
                if ivs == ((0, lanes),):
                    h = jnp.maximum(h, 0.0)
                else:
                    lane = jax.lax.broadcasted_iota(jnp.int32, h.shape, 1)
                    mask = None
                    for lo, hi in ivs:
                        m = (lane >= lo) & (lane < hi)
                        mask = m if mask is None else (mask | m)
                    h = jnp.where(mask, jnp.maximum(h, 0.0), h)
            # Dropout is identity in eval mode.
            # TODO(synk): train-mode dropout would need pltpu.prng_seed/prng_random_bits masking.
        o_ref[...] = h.astype(o_ref.dtype)                        # (bt, lanes): unmasked lane-dense store

    return kernel


def obs_encoder_forward(obs_list, slab, meta, *, out_dtype=None):
    """Fused ObsEncoder.forward. Returns (B, 1, proj_dim) == torch output."""
    B = obs_list[0].shape[0]
    proj_dim, lanes = meta["proj_dim"], meta["lanes"]
    out_dtype = out_dtype or obs_list[0].dtype

    # per-call input plumbing: a single lane-concat of the (tiny) obs vectors
    x = obs_list[0] if len(obs_list) == 1 else jnp.concatenate(obs_list, axis=-1)
    in_width = x.shape[1]
    assert in_width == meta["in_width"]

    # batch tiling: whole batch in one grid step for small B; 8-aligned 1024-row
    # tiles (+ zero pad, cdiv grid) otherwise so v7x can shard across its 2 TCs.
    if B <= 1024:
        bt, grid_b, b_pad = B, 1, B
    else:
        bt = 1024
        grid_b = pl.cdiv(B, bt)
        b_pad = grid_b * bt
        if b_pad != B:
            x = jnp.pad(x, ((0, b_pad - B), (0, 0)))

    kernel = _make_kernel(meta["w_slices"], meta["b_rows"],
                          meta["relu_intervals"], lanes)

    y = pl.pallas_call(
        kernel,
        out_shape=jax.ShapeDtypeStruct((b_pad, lanes), out_dtype),
        grid=(grid_b,),
        in_specs=[pl.BlockSpec((bt, in_width), lambda bi: (bi, 0)),
                  pl.BlockSpec(slab.shape, lambda bi: (0, 0))],
        out_specs=pl.BlockSpec((bt, lanes), lambda bi: (bi, 0)),
        compiler_params=pltpu.CompilerParams(
            dimension_semantics=("parallel",)),
    )(x, slab)

    if b_pad != B or lanes != proj_dim:
        y = y[:B, :proj_dim]
    return y.reshape(B, 1, proj_dim)          # torch's unsqueeze(1): free reshape


def ref_forward(obs_list, enc_params, final_w, final_b):
    """Pure numpy reference of ObsEncoder.forward (eval mode: Dropout = identity)."""
    hs = []
    for x, layers in zip(obs_list, enc_params):
        h = np.asarray(x, np.float64)
        for li, (w, b) in enumerate(layers):
            h = h @ np.asarray(w, np.float64).T + np.asarray(b, np.float64)
            if li < len(layers) - 1:
                h = np.maximum(h, 0.0)
        hs.append(h)
    x = np.concatenate(hs, axis=-1)
    y = x @ np.asarray(final_w, np.float64).T + np.asarray(final_b, np.float64)
    return y[:, None, :]


if __name__ == "__main__":
    key = jax.random.PRNGKey(0)
    keys = iter(jax.random.split(key, 32))
    B = 2

    obs_list = [jax.random.normal(next(keys), (B, d), jnp.float32) for d in INPUT_DIMS]

    enc_params = []
    for i in range(len(INPUT_DIMS)):
        sizes = [INPUT_DIMS[i]] + [OUTPUT_DIMS[i]] * NUM_LAYERS[i]
        layers = []
        for l in range(NUM_LAYERS[i]):
            w = jax.random.normal(next(keys), (sizes[l + 1], sizes[l]),
                                  jnp.float32) / np.sqrt(sizes[l])
            b = 0.1 * jax.random.normal(next(keys), (sizes[l + 1],), jnp.float32)
            layers.append((w, b))
        enc_params.append(layers)

    cat_dim = sum(OUTPUT_DIMS)
    final_w = jax.random.normal(next(keys), (PROJ_DIM, cat_dim),
                                jnp.float32) / np.sqrt(cat_dim)
    final_b = 0.1 * jax.random.normal(next(keys), (PROJ_DIM,), jnp.float32)

    # one-time prep, hoisted out of the per-forward hot path
    slab, meta = pack_obs_encoder_params(enc_params, final_w, final_b)
    slab = jax.block_until_ready(slab)

    # hot path: concat obs -> single fused pallas_call (meta/slab are fixed)
    fwd = jax.jit(lambda obs, slab_: obs_encoder_forward(obs, slab_, meta))
    y = jax.block_until_ready(fwd(obs_list, slab))

    y_ref = ref_forward(obs_list, enc_params, final_w, final_b)
    np.testing.assert_allclose(np.asarray(y), y_ref, atol=2e-4, rtol=2e-4)
    assert y.shape == (B, 1, PROJ_DIM)
    print("KERNEL_OK")
</pallas_src>

<mosaic_0001>
module attributes {stable_mosaic.version = 11 : i64} {
  func.func @kernel(%arg0: i32, %arg1: memref<2x48xf32, #tpu.memory_space<vmem>>, %arg2: memref<328x128xf32, #tpu.memory_space<vmem>>, %arg3: memref<2x128xf32, #tpu.memory_space<vmem>>) attributes {dimension_semantics = [#tpu.dimension_semantics<parallel>], iteration_bounds = array<i64: 1>, scalar_prefetch = 0 : i64, scratch_operands = 0 : i64, tpu.core_type = #tpu.core_type<tc>, window_params = [{transform_indices = @transform_0, window_bounds = array<i64: 2, 48>}, {pipeline_mode = #tpu.pipeline_mode<synchronous>, transform_indices = @transform_1, window_bounds = array<i64: 328, 128>}, {transform_indices = @transform_2, window_bounds = array<i64: 2, 128>}]} {
    %c0 = arith.constant 0 : index
    %c0_0 = arith.constant 0 : index
    %0 = vector.load %arg1[%c0, %c0_0] : memref<2x48xf32, #tpu.memory_space<vmem>>, vector<2x48xf32>
    %c0_1 = arith.constant 0 : index
    %c0_2 = arith.constant 0 : index
    %1 = vector.load %arg2[%c0_1, %c0_2] : memref<328x128xf32, #tpu.memory_space<vmem>>, vector<48x128xf32>
    %c48 = arith.constant 48 : index
    %c0_3 = arith.constant 0 : index
    %2 = vector.load %arg2[%c48, %c0_3] : memref<328x128xf32, #tpu.memory_space<vmem>>, vector<1x128xf32>
    %cst = arith.constant dense<0.000000e+00> : vector<2x128xf32>
    %3 = tpu.matmul %0, %1, %cst {dimension_numbers = #tpu.dot_dimension_numbers<[1], [0], [0], [1], [0, 0, 1, 1], [], []>} : vector<2x48xf32>, vector<48x128xf32>, vector<2x128xf32> -> vector<2x128xf32>
    %4 = vector.broadcast %2 : vector<1x128xf32> to vector<2x128xf32>
    %5 = arith.addf %3, %4 : vector<2x128xf32>
    %6 = tpu.iota {dimensions = array<i32: 1>} : vector<2x128xi32>
    %c0_i32 = arith.constant 0 : i32
    %7 = vector.broadcast %c0_i32 : i32 to vector<2x128xi32>
    %8 = arith.cmpi sge, %6, %7 : vector<2x128xi32>
    %c64_i32 = arith.constant 64 : i32
    %9 = vector.broadcast %c64_i32 : i32 to vector<2x128xi32>
    %10 = arith.cmpi slt, %6, %9 : vector<2x128xi32>
    %11 = arith.andi %8, %10 : vector<2x128xi1>
    %cst_4 = arith.constant 0.000000e+00 : f32
    %12 = vector.broadcast %cst_4 : f32 to vector<2x128xf32>
    %13 = arith.maximumf %5, %12 : vector<2x128xf32>
    %14 = arith.select %11, %13, %5 : vector<2x128xi1>, vector<2x128xf32>
    %c56 = arith.constant 56 : index
    %c0_5 = arith.constant 0 : index
    %15 = vector.load %arg2[%c56, %c0_5] : memref<328x128xf32, #tpu.memory_space<vmem>>, vector<128x128xf32>
    %c184 = arith.constant 184 : index
    %c0_6 = arith.constant 0 : index
    %16 = vector.load %arg2[%c184, %c0_6] : memref<328x128xf32, #tpu.memory_space<vmem>>, vector<1x128xf32>
    %cst_7 = arith.constant dense<0.000000e+00> : vector<2x128xf32>
    %17 = tpu.matmul %14, %15, %cst_7 {dimension_numbers = #tpu.dot_dimension_numbers<[1], [0], [0], [1], [0, 0, 1, 1], [], []>} : vector<2x128xf32>, vector<128x128xf32>, vector<2x128xf32> -> vector<2x128xf32>
    %18 = vector.broadcast %16 : vector<1x128xf32> to vector<2x128xf32>
    %19 = arith.addf %17, %18 : vector<2x128xf32>
    %c192 = arith.constant 192 : index
    %c0_8 = arith.constant 0 : index
    %20 = vector.load %arg2[%c192, %c0_8] : memref<328x128xf32, #tpu.memory_space<vmem>>, vector<128x128xf32>
    %c320 = arith.constant 320 : index
    %c0_9 = arith.constant 0 : index
    %21 = vector.load %arg2[%c320, %c0_9] : memref<328x128xf32, #tpu.memory_space<vmem>>, vector<1x128xf32>
    %cst_10 = arith.constant dense<0.000000e+00> : vector<2x128xf32>
    %22 = tpu.matmul %19, %20, %cst_10 {dimension_numbers = #tpu.dot_dimension_numbers<[1], [0], [0], [1], [0, 0, 1, 1], [], []>} : vector<2x128xf32>, vector<128x128xf32>, vector<2x128xf32> -> vector<2x128xf32>
    %23 = vector.broadcast %21 : vector<1x128xf32> to vector<2x128xf32>
    %24 = arith.addf %22, %23 : vector<2x128xf32>
    %c0_11 = arith.constant 0 : index
    %c0_12 = arith.constant 0 : index
    %25 = vector.load %arg3[%c0_11, %c0_12] : memref<2x128xf32, #tpu.memory_space<vmem>>, vector<2x128xf32>
    tpu.vector_store %arg3[%c0_11, %c0_12], %24 {strides = array<i32>} : memref<2x128xf32, #tpu.memory_space<vmem>>, vector<2x128xf32>,
    return
  }
  func.func @transform_0(%arg0: i32) -> (i32, i32) {
    %c0_i32 = arith.constant 0 : i32
    %c0_i32_0 = arith.constant 0 : i32
    return %arg0, %c0_i32 : i32, i32
  }
  func.func @transform_1(%arg0: i32) -> (i32, i32) {
    %c0_i32 = arith.constant 0 : i32
    %c0_i32_0 = arith.constant 0 : i32
    %c0_i32_1 = arith.constant 0 : i32
    return %c0_i32, %c0_i32_0 : i32, i32
  }
  func.func @transform_2(%arg0: i32) -> (i32, i32) {
    %c0_i32 = arith.constant 0 : i32
    %c0_i32_0 = arith.constant 0 : i32
    return %arg0, %c0_i32 : i32, i32
  }
}

</mosaic_0001>

<bundles_post_ra>
// kernel: _lambda_.1
= control target key start
LH: loop header
LB: loop body
LE: loop exit
PB: predicated region body
PF: predicated region fallthrough
CT: control target
= control target key end

     0   :  { %7 = vsyncpa [#allocation3], 0  ;;  %s630_s0 = inlined_call_operand.vmem [shape: f32[2,48], index: 0, kind: input, shape index: {}]   ;;  %s631_s1 = inlined_call_operand.hbm [shape: f32[328,128], index: 1, kind: input, shape index: {}]   ;;  %s632_s2 = inlined_call_operand.hbm [shape: f32[2,128], index: 2, kind: output, shape index: {}]  }
   0x1   :  { %8 = vsyncpa [#allocation4], 0  ;;  %s559_s9 = smov [#allocation2]   ;;  %s511_s13 = scalar_lea.hbm %s631_s1, 5248 }
   0x2   :  { %s16_s10 = sshll.u32 %s559_s9, 4  ;;  %p512_p0 = scmp.ne.s32.totalorder %s631_s1, %s511_s13  ;;  %s17_s10 = int_to_ptr.vmem [resolvable:$true] %s16_s10 }
   0x3   :  { %p515_p1 = scmp.lt.u32.totalorder %s511_s13, %s631_s1 }
   0x5   :  { %p517_p2 = pnand %p515_p1, %p512_p0 }
   0x7   :  { %520 = shalt.err (!%p517_p2)
}
   0x8   :  { %s521_s18 = scalar_lea.vmem %s17_s10, 5248  ;;  %p526_p4 = scmp.lt.s32.totalorder %s17_s10, %s17_s10 }
   0x9   :  { %p522_p3 = scmp.ne.s32.totalorder %s17_s10, %s521_s18  ;;  %p527_p5 = scmp.lt.s32.totalorder %s521_s18, %s521_s18 }
   0xb   :  { %p528_p6 = por %p527_p5, %p526_p4 }
   0xd   :  { %p529_p7 = pnand %p528_p6, %p522_p3 }
   0xf   :  { %532 = shalt.err (!%p529_p7)
}
  0x10   :  { %s560_s19 = smov 128   ;;  %s561_s20 = smov 8  }
  0x11   :  { %22 = dma.hbm_to_vmem [thread:$0]  %s631_s1, 5248, %s17_s10, [#allocation3], %s560_s19, %s560_s19, %s561_s20  }
  0x12   :  { %555 = dma.done.wait [#allocation3], 5248  }
  0x13   :  { %556 = vsyncadd [#allocation3], 4294962048  ;;  %v562_v0 = vmov 0.0|0.0   ;;  %vm563_vm0 = vmmov 0   ;;  %v564_v1 = vmov 0.0   ;;  %v27_v2 = vld [vmem:[#allocation2] sm:$0xff]  ;;  %v112_v57 = vlaneseq }
  0x14   :  { %447 = vmatprep.subr.bf16.mxu0 %v562_v0  ;;  %374 = vmatprep.mubr.msk.f32.mxu0 %vm563_vm0, %v564_v1  ;;  %v28_v3 = vld [vmem:[#allocation2 + $0x8] sm:$0xff]  ;;  %v29_v4 = vld [vmem:[#allocation2 + $0x10] sm:$0xff]  ;;  %v30_v6 = vld [vmem:[#allocation2 + $0x18] sm:$0xff]  ;;  %vm38_vm1 = vcmask 392192  }
  0x15   :  { %456 = vmatprep.subr.bf16.mxu1 %v562_v0  ;;  %409 = vmatprep.mubr.msk.f32.mxu1 %vm563_vm0, %v564_v1  ;;  %v448_v5 = vpack.c.bf16 %v28_v3, %v27_v2  ;;  %v119_v7 = vld [vmem:[#allocation2 + $0x38] sm:$0xff]  ;;  %v120_v8 = vld [vmem:[#allocation2 + $0x40] sm:$0xff]  ;;  %v451_v9 = vpack.c.bf16 %v30_v6, %v29_v4  ;;  %v121_v11 = vld [vmem:[#allocation2 + $0x48] sm:$0xff]  ;;  %v113_v59 = vand.u32 127, %v112_v57 }
  0x16   :  { %v457_v10 = vpack.c.bf16 %v120_v8, %v119_v7  ;;  %v122_v12 = vld [vmem:[#allocation2 + $0x50] sm:$0xff]  ;;  %v31_v13 = vld [vmem:[#allocation2 + $0x20] sm:$0xff]  ;;  %v32_v14 = vld [vmem:[#allocation2 + $0x28] sm:$0xff] }
  0x17   :  { %449 = vmatpush3.bf16.msra.mxu0 %v448_v5  ;;  %v460_v15 = vpack.c.bf16 %v122_v12, %v121_v11  ;;  %v123_v16 = vld [vmem:[#allocation2 + $0x58] sm:$0xff]  ;;  %v124_v17 = vld [vmem:[#allocation2 + $0x60] sm:$0xff]  ;;  %v454_v18 = vpack.c.bf16 %v32_v14, %v31_v13  ;;  %v125_v20 = vld [vmem:[#allocation2 + $0x68] sm:$0xff]  ;;  %vm115_vm2 = vcmp.lt.s32.totalorder %v113_v59, 64 }
  0x18   :  { %450 = vmatprep.subr.bf16.mxu0 %v562_v0  ;;  %458 = vmatpush3.bf16.msra.mxu1 %v457_v10  ;;  %v463_v19 = vpack.c.bf16 %v124_v17, %v123_v16  ;;  %v126_v21 = vld [vmem:[#allocation2 + $0x70] sm:$0xff]  ;;  %v26_v22 = vld [vmem:[%s630_s0] sm:$0x3]  ;;  %v127_v24 = vld [vmem:[#allocation2 + $0x78] sm:$0xff]  ;;  %s565_s0 = smov [#allocation5]  }
  0x19   :  { %459 = vmatprep.subr.bf16.mxu1 %v562_v0  ;;  %v466_v23 = vpack.c.bf16 %v126_v21, %v125_v20  ;;  %v128_v25 = vld [vmem:[#allocation2 + $0x80] sm:$0xff]  ;;  %v129_v27 = vld [vmem:[#allocation2 + $0x88] sm:$0xff]  ;;  %v130_v28 = vld [vmem:[#allocation2 + $0x90] sm:$0xff]  ;;  %s308_s24 = sshll.u32 %s565_s0, 4  ;;  %s309_s24 = int_to_ptr.vmem [resolvable:$true] %s308_s24 }
  0x1a   :  { %v469_v26 = vpack.c.bf16 %v128_v25, %v127_v24  ;;  %v472_v29 = vpack.c.bf16 %v130_v28, %v129_v27  ;;  %v131_v30 = vld [vmem:[#allocation2 + $0x98] sm:$0xff]  ;;  %v132_v31 = vld [vmem:[#allocation2 + $0xa0] sm:$0xff]  ;;  %v133_v33 = vld [vmem:[#allocation2 + $0xa8] sm:$0xff]  ;;  %s533_s25 = scalar_lea.vmem %s309_s24, 32  ;;  %p538_p9 = scmp.lt.s32.totalorder %s309_s24, %s309_s24 }
  0x1b   :  { %452 = vmatpush3.bf16.msra.mxu0 %v451_v9  ;;  %v475_v32 = vpack.c.bf16 %v132_v31, %v131_v30  ;;  %v134_v34 = vld [vmem:[#allocation2 + $0xb0] sm:$0xff]  ;;  %v210_v36 = vld [vmem:[#allocation2 + $0xc0] sm:$0xff]  ;;  %v211_v37 = vld [vmem:[#allocation2 + $0xc8] sm:$0xff]  ;;  %p534_p8 = scmp.ne.s32.totalorder %s309_s24, %s533_s25  ;;  %p539_p10 = scmp.lt.s32.totalorder %s533_s25, %s533_s25 }
  0x1c   :  { %453 = vmatprep.subr.bf16.mxu0 %v562_v0  ;;  %461 = vmatpush3.bf16.msra.mxu1 %v460_v15  ;;  %v478_v35 = vpack.c.bf16 %v134_v34, %v133_v33  ;;  %v212_v38 = vld [vmem:[#allocation2 + $0xd0] sm:$0xff]  ;;  %v481_v39 = vpack.c.bf16 %v211_v37, %v210_v36  ;;  %v213_v40 = vld [vmem:[#allocation2 + $0xd8] sm:$0xff]  ;;  %v214_v42 = vld [vmem:[#allocation2 + $0xe0] sm:$0xff] }
  0x1d   :  { %462 = vmatprep.subr.bf16.mxu1 %v562_v0  ;;  %v484_v41 = vpack.c.bf16 %v213_v40, %v212_v38  ;;  %v215_v43 = vld [vmem:[#allocation2 + $0xe8] sm:$0xff]  ;;  %v216_v45 = vld [vmem:[#allocation2 + $0xf0] sm:$0xff]  ;;  %v217_v46 = vld [vmem:[#allocation2 + $0xf8] sm:$0xff]  ;;  %p540_p11 = por %p539_p10, %p538_p9 }
  0x1e   :  { %v487_v44 = vpack.c.bf16 %v215_v43, %v214_v42  ;;  %v490_v47 = vpack.c.bf16 %v217_v46, %v216_v45  ;;  %v218_v48 = vld [vmem:[#allocation2 + $0x100] sm:$0xff]  ;;  %v219_v49 = vld [vmem:[#allocation2 + $0x108] sm:$0xff]  ;;  %v220_v51 = vld [vmem:[#allocation2 + $0x110] sm:$0xff] }
  0x1f   :  { %455 = vmatpush3.bf16.msra.mxu0 %v454_v18  ;;  %v493_v50 = vpack.c.bf16 %v219_v49, %v218_v48  ;;  %v221_v52 = vld [vmem:[#allocation2 + $0x118] sm:$0xff]  ;;  %v222_v54 = vld [vmem:[#allocation2 + $0x120] sm:$0xff]  ;;  %v223_v55 = vld [vmem:[#allocation2 + $0x128] sm:$0xff]  ;;  %p541_p12 = pnand %p540_p11, %p534_p8 }
  0x20   :  { %480 = vmatprep.subr.bf16.mxu0 %v562_v0  ;;  %464 = vmatpush3.bf16.msra.mxu1 %v463_v19  ;;  %v496_v53 = vpack.c.bf16 %v221_v52, %v220_v51  ;;  %v499_v56 = vpack.c.bf16 %v223_v55, %v222_v54  ;;  %v317_v58 = vld [vmem:[#allocation2 + $0x30] ss:$0 sm:$0xff]  ;;  %v225_v3 = vld [vmem:[#allocation2 + $0x138] sm:$0xff] }
  0x21   :  { %465 = vmatprep.subr.bf16.mxu1 %v562_v0  ;;  %v224_v2 = vld [vmem:[#allocation2 + $0x130] sm:$0xff]  ;;  %v319_v5 = vld [vmem:[#allocation2 + $0xb8] ss:$0 sm:$0xff] }
  0x22   :  { %375 = vmatmul.mubr.msk.f32.vlgmr.msra.gmra.mrb[0].mxu0 %vm38_vm1, %v26_v22  ;;  %v502_v4 = vpack.c.bf16 %v225_v3, %v224_v2 }
  0x23   :  { %444 = vmatprep.mubr.msk.f32.mxu0 %vm563_vm0, %v564_v1  ;;  %482 = vmatpush3.bf16.msra.mxu0 %v481_v39 }
  0x24   :  { %467 = vmatpush3.bf16.msra.mxu1 %v466_v23  ;;  %483 = vmatprep.subr.bf16.mxu0 %v562_v0 }
  0x25   :  { %468 = vmatprep.subr.bf16.mxu1 %v562_v0 }
  0x27   :  { %485 = vmatpush3.bf16.msra.mxu0 %v484_v41 }
  0x28   :  { %470 = vmatpush3.bf16.msra.mxu1 %v469_v26  ;;  %486 = vmatprep.subr.bf16.mxu0 %v562_v0 }
  0x29   :  { %471 = vmatprep.subr.bf16.mxu1 %v562_v0 }
  0x2b   :  { %488 = vmatpush3.bf16.msra.mxu0 %v487_v44 }
  0x2c   :  { %473 = vmatpush3.bf16.msra.mxu1 %v472_v29  ;;  %489 = vmatprep.subr.bf16.mxu0 %v562_v0 }
  0x2d   :  { %474 = vmatprep.subr.bf16.mxu1 %v562_v0 }
  0x2f   :  { %491 = vmatpush3.bf16.msra.mxu0 %v490_v47 }
  0x30   :  { %476 = vmatpush3.bf16.msra.mxu1 %v475_v32  ;;  %492 = vmatprep.subr.bf16.mxu0 %v562_v0 }
  0x31   :  { %477 = vmatprep.subr.bf16.mxu1 %v562_v0 }
  0x33   :  { %494 = vmatpush3.bf16.msra.mxu0 %v493_v50 }
  0x34   :  { %479 = vmatpush3.bf16.msra.mxu1 %v478_v35  ;;  %495 = vmatprep.subr.bf16.mxu0 %v562_v0 }
  0x37   :  { %497 = vmatpush3.bf16.msra.mxu0 %v496_v53 }
  0x38   :  { %498 = vmatprep.subr.bf16.mxu0 %v562_v0 }
  0x3b   :  { %500 = vmatpush3.bf16.msra.mxu0 %v499_v56 }
  0x3c   :  { %501 = vmatprep.subr.bf16.mxu0 %v562_v0  ;;  %v320_v0 = vld [vmem:[#allocation2 + $0x140] ss:$0 sm:$0xff] }
  0x3f   :  { %503 = vmatpush3.bf16.msra.mxu0 %v502_v4 }
  0xf5   :  { %v108_v60 = vpop.f32.mrb[0].mxu0 }
  0xf6   :  { %v109_v61 = vadd.f32 %v317_v58, %v108_v60  ;;  %v376_v62 = vpop.f32.mrb[1].mxu0 }
  0xf8   :  { %v117_v63 = vmax.f32 %v109_v61, 0.0 }
  0xfa   :  { %v118_v1 = vsel %vm115_vm2, %v117_v63, %v109_v61 }
  0xfb   :  { %410 = vmatmul.mubr.f32.vlgmr.msra.gmra.mrb[0].mxu1 %v118_v1 }
 0x1ce   :  { %v206_v6 = vpop.f32.mrb[0].mxu1 }
 0x1cf   :  { %v207_v7 = vadd.f32 %v319_v5, %v206_v6  ;;  %v411_v8 = vpop.f32.mrb[1].mxu1 }
 0x1d1   :  { %445 = vmatmul.mubr.f32.vlgmr.msra.gmra.mrb[2].mxu0 %v207_v7 }
 0x2a4   :  { %v297_v9 = vpop.f32.mrb[2].mxu0 }
 0x2a5   :  { %v298_v10 = vadd.f32 %v320_v0, %v297_v9  ;;  %v446_v11 = vpop.f32.mrb[3].mxu0 }
 0x2a7   :  { %301 = vst [vmem:[#allocation5] sm:$0x3] %v298_v10 }
 0x2a8   :  { %544 = shalt.err (!%p541_p12)
}
 0x2a9   :  { %s545_s28 = scalar_lea.hbm %s632_s2, 32 }
 0x2aa   :  { %p546_p13 = scmp.ne.s32.totalorder %s632_s2, %s545_s28  ;;  %p549_p0 = scmp.lt.u32.totalorder %s545_s28, %s632_s2 }
 0x2ac   :  { %p551_p1 = pnand %p549_p0, %p546_p13 }
 0x2ae   :  { %554 = shalt.err (!%p551_p1)
}
 0x2af   :  { %311 = dma.vmem_to_hbm [thread:$0]  %s309_s24, 32, %s632_s2, [#allocation4]  }
 0x2b0   :  { %557 = dma.done.wait [#allocation4], 32  }
 0x2b1   :  { %558 = vsyncadd [#allocation4], 4294967264 }
 0x2b2   :  { %315 = vsyncpa [#allocation3], 1 }
 0x2b3   :  { %316 = vsyncpa [#allocation4], 1 }

</bundles_post_ra>
